<compile_context>
chip_gen: v7x
topology: tpu7x:2x2x1
jax: 0.10.0
libtpu: 0.0.40
codegen_flags: <defaults>
</compile_context>

<pallas_src>
import functools

import jax
import jax.numpy as jnp
from jax.experimental import pallas as pl
from jax.experimental.pallas import tpu as pltpu

SCALE_FACTOR = 10.0
DROPOUT_P = 0.01


def _attn_dropout_kernel(q_ref, k_ref, v_ref, drop_ref, o_ref, *, scale_factor):
    # q_ref/k_ref/v_ref: (TB, S, D) VMEM tiles; drop_ref: (TB, S, S) keep-mask
    # already scaled by 1/(1-p) (inverted dropout).
    q = q_ref[...]
    k = k_ref[...]
    v = v_ref[...]

    # Scores: batched contraction on D, no transposed copy of K.
    s = jnp.einsum("bqd,bkd->bqk", q, k,
                   preferred_element_type=jnp.float32) * scale_factor

    # Numerically stable softmax over the last axis.
    m = jnp.max(s, axis=-1, keepdims=True)
    e = jnp.exp(s - m)
    inv = pl.reciprocal(jnp.sum(e, axis=-1, keepdims=True), approx=True)
    p = e * inv

    # Inverted dropout: single multiply (mask holds 0 or 1/(1-p)).
    p = p * drop_ref[...]

    # output = dropout(softmax(qk)) @ v
    o_ref[...] = jnp.einsum("bqk,bkd->bqd", p, v,
                            preferred_element_type=jnp.float32
                            ).astype(o_ref.dtype)


def attention_dropout(q, k, v, *, scale_factor=SCALE_FACTOR,
                      dropout_p=DROPOUT_P, dropout_key=None, block_heads=None):
    """Fused attention + dropout. q, k, v: (B, H, S, D) float32."""
    B, H, S, D = q.shape
    BH = B * H
    qf = q.reshape(BH, S, D)
    kf = k.reshape(BH, S, D)
    vf = v.reshape(BH, S, D)

    # Bernoulli keep-mask, pre-scaled by 1/(1-p) (training=True F.dropout).
    if dropout_p > 0.0:
        if dropout_key is None:
            dropout_key = jax.random.PRNGKey(0)
        keep = jax.random.bernoulli(dropout_key, 1.0 - dropout_p, (BH, S, S))
        drop = keep.astype(jnp.float32) * jnp.float32(1.0 / (1.0 - dropout_p))
    else:
        drop = jnp.ones((BH, S, S), dtype=jnp.float32)

    # All heads in one grid step by default (BH=8, S=8, D=32 -> a few KiB of
    # VMEM). For much larger S, cap block_heads / retile against the 64 MiB
    # v7x VMEM budget and set pltpu.CompilerParams(vmem_limit_bytes=...).
    TB = BH if block_heads is None else min(block_heads, BH)
    assert BH % TB == 0, "block_heads must divide B*H"
    grid = (BH // TB,)

    blk_qkv = pl.BlockSpec((TB, S, D), lambda b: (b, 0, 0))
    blk_drp = pl.BlockSpec((TB, S, S), lambda b: (b, 0, 0))

    kernel = functools.partial(_attn_dropout_kernel, scale_factor=scale_factor)

    out = pl.pallas_call(
        kernel,
        out_shape=jax.ShapeDtypeStruct((BH, S, D), q.dtype),
        grid=grid,
        in_specs=[blk_qkv, blk_qkv, blk_qkv, blk_drp],
        out_specs=blk_qkv,
        compiler_params=pltpu.CompilerParams(
            dimension_semantics=("parallel",)),  # shards across TCs on v7x
    )(qf, kf, vf, drop)

    return out.reshape(B, H, S, D)


def _reference(q, k, v, scale_factor, drop_mask):
    # Pure-JAX reference with an externally supplied dropout mask.
    s = jnp.einsum("bhqd,bhkd->bhqk", q, k) * scale_factor
    p = jax.nn.softmax(s, axis=-1) * drop_mask
    return jnp.einsum("bhqk,bhkd->bhqd", p, v)


if __name__ == "__main__":
    key = jax.random.PRNGKey(0)
    kq, kk, kv, kd = jax.random.split(key, 4)
    B, H, S, D = 2, 4, 8, 32
    q = jax.random.normal(kq, (B, H, S, D), dtype=jnp.float32)
    k = jax.random.normal(kk, (B, H, S, D), dtype=jnp.float32)
    v = jax.random.normal(kv, (B, H, S, D), dtype=jnp.float32)

    # Run with the module's dropout config.
    out = attention_dropout(q, k, v, scale_factor=SCALE_FACTOR,
                            dropout_p=DROPOUT_P, dropout_key=kd)
    jax.block_until_ready(out)
    assert out.shape == (B, H, S, D) and out.dtype == jnp.float32

    # Sanity check (dropout disabled so the result is deterministic).
    out_nodrop = attention_dropout(q, k, v, scale_factor=SCALE_FACTOR,
                                   dropout_p=0.0)
    ref_nodrop = _reference(q, k, v, SCALE_FACTOR,
                            jnp.ones((B, H, S, S), jnp.float32))
    jax.block_until_ready(out_nodrop)
    assert jnp.allclose(out_nodrop, ref_nodrop, rtol=1e-2, atol=1e-2)

    print("KERNEL_OK")
</pallas_src>

<mosaic_0001>
module attributes {stable_mosaic.version = 11 : i64} {
  func.func @_attn_dropout_kernel(%arg0: i32, %arg1: memref<8x8x32xf32, #tpu.memory_space<vmem>>, %arg2: memref<8x8x32xf32, #tpu.memory_space<vmem>>, %arg3: memref<8x8x32xf32, #tpu.memory_space<vmem>>, %arg4: memref<8x8x8xf32, #tpu.memory_space<vmem>>, %arg5: memref<8x8x32xf32, #tpu.memory_space<vmem>>) attributes {dimension_semantics = [#tpu.dimension_semantics<parallel>], iteration_bounds = array<i64: 1>, scalar_prefetch = 0 : i64, scratch_operands = 0 : i64, tpu.core_type = #tpu.core_type<tc>, window_params = [{transform_indices = @transform_0, window_bounds = array<i64: 8, 8, 32>}, {transform_indices = @transform_1, window_bounds = array<i64: 8, 8, 32>}, {transform_indices = @transform_2, window_bounds = array<i64: 8, 8, 32>}, {transform_indices = @transform_3, window_bounds = array<i64: 8, 8, 8>}, {transform_indices = @transform_4, window_bounds = array<i64: 8, 8, 32>}]} {
    %c0 = arith.constant 0 : index
    %c0_0 = arith.constant 0 : index
    %c0_1 = arith.constant 0 : index
    %0 = vector.load %arg1[%c0, %c0_0, %c0_1] : memref<8x8x32xf32, #tpu.memory_space<vmem>>, vector<8x8x32xf32>
    %c0_2 = arith.constant 0 : index
    %c0_3 = arith.constant 0 : index
    %c0_4 = arith.constant 0 : index
    %1 = vector.load %arg2[%c0_2, %c0_3, %c0_4] : memref<8x8x32xf32, #tpu.memory_space<vmem>>, vector<8x8x32xf32>
    %c0_5 = arith.constant 0 : index
    %c0_6 = arith.constant 0 : index
    %c0_7 = arith.constant 0 : index
    %2 = vector.load %arg3[%c0_5, %c0_6, %c0_7] : memref<8x8x32xf32, #tpu.memory_space<vmem>>, vector<8x8x32xf32>
    "tpu.trace_start"() <{level = 10 : i32, message = "bqd,bkd->bqk"}> : () -> ()
    %cst = arith.constant dense<0.000000e+00> : vector<8x8x8xf32>
    %3 = tpu.matmul %0, %1, %cst {dimension_numbers = #tpu.dot_dimension_numbers<[2], [2], [1], [1], [0, 0, 0, 1, 1, 1], [0], [0]>} : vector<8x8x32xf32>, vector<8x8x32xf32>, vector<8x8x8xf32> -> vector<8x8x8xf32>
    "tpu.trace_stop"() : () -> ()
    %cst_8 = arith.constant 1.000000e+01 : f32
    %4 = vector.broadcast %cst_8 : f32 to vector<8x8x8xf32>
    %5 = arith.mulf %3, %4 : vector<8x8x8xf32>
    %cst_9 = arith.constant dense<0xFF800000> : vector<8x8xf32>
    %6 = vector.multi_reduction <maximumf>, %5, %cst_9 [2] : vector<8x8x8xf32> to vector<8x8xf32>
    %7 = vector.shape_cast %6 : vector<8x8xf32> to vector<8x8x1xf32>
    %8 = vector.broadcast %7 : vector<8x8x1xf32> to vector<8x8x8xf32>
    %9 = arith.subf %5, %8 : vector<8x8x8xf32>
    %10 = math.exp %9 : vector<8x8x8xf32>
    %cst_10 = arith.constant dense<0.000000e+00> : vector<8x8xf32>
    %11 = vector.multi_reduction <add>, %10, %cst_10 [2] : vector<8x8x8xf32> to vector<8x8xf32>
    %12 = vector.shape_cast %11 : vector<8x8xf32> to vector<8x8x1xf32>
    %13 = tpu.reciprocal %12 {approx = true} : vector<8x8x1xf32> -> vector<8x8x1xf32>
    %14 = vector.broadcast %13 : vector<8x8x1xf32> to vector<8x8x8xf32>
    %15 = arith.mulf %10, %14 : vector<8x8x8xf32>
    %c0_11 = arith.constant 0 : index
    %c0_12 = arith.constant 0 : index
    %c0_13 = arith.constant 0 : index
    %16 = vector.load %arg4[%c0_11, %c0_12, %c0_13] : memref<8x8x8xf32, #tpu.memory_space<vmem>>, vector<8x8x8xf32>
    %17 = arith.mulf %15, %16 : vector<8x8x8xf32>
    "tpu.trace_start"() <{level = 10 : i32, message = "bqk,bkd->bqd"}> : () -> ()
    %cst_14 = arith.constant dense<0.000000e+00> : vector<8x8x32xf32>
    %18 = tpu.matmul %17, %2, %cst_14 {dimension_numbers = #tpu.dot_dimension_numbers<[2], [1], [1], [2], [0, 0, 0, 1, 1, 2], [0], [0]>} : vector<8x8x8xf32>, vector<8x8x32xf32>, vector<8x8x32xf32> -> vector<8x8x32xf32>
    "tpu.trace_stop"() : () -> ()
    %c0_15 = arith.constant 0 : index
    %c0_16 = arith.constant 0 : index
    %c0_17 = arith.constant 0 : index
    %19 = vector.load %arg5[%c0_15, %c0_16, %c0_17] : memref<8x8x32xf32, #tpu.memory_space<vmem>>, vector<8x8x32xf32>
    tpu.vector_store %arg5[%c0_15, %c0_16, %c0_17], %18 {strides = array<i32>} : memref<8x8x32xf32, #tpu.memory_space<vmem>>, vector<8x8x32xf32>,
    return
  }
  func.func @transform_0(%arg0: i32) -> (i32, i32, i32) {
    %c0_i32 = arith.constant 0 : i32
    %c0_i32_0 = arith.constant 0 : i32
    %c0_i32_1 = arith.constant 0 : i32
    return %arg0, %c0_i32, %c0_i32_0 : i32, i32, i32
  }
  func.func @transform_1(%arg0: i32) -> (i32, i32, i32) {
    %c0_i32 = arith.constant 0 : i32
    %c0_i32_0 = arith.constant 0 : i32
    %c0_i32_1 = arith.constant 0 : i32
    return %arg0, %c0_i32, %c0_i32_0 : i32, i32, i32
  }
  func.func @transform_2(%arg0: i32) -> (i32, i32, i32) {
    %c0_i32 = arith.constant 0 : i32
    %c0_i32_0 = arith.constant 0 : i32
    %c0_i32_1 = arith.constant 0 : i32
    return %arg0, %c0_i32, %c0_i32_0 : i32, i32, i32
  }
  func.func @transform_3(%arg0: i32) -> (i32, i32, i32) {
    %c0_i32 = arith.constant 0 : i32
    %c0_i32_0 = arith.constant 0 : i32
    %c0_i32_1 = arith.constant 0 : i32
    return %arg0, %c0_i32, %c0_i32_0 : i32, i32, i32
  }
  func.func @transform_4(%arg0: i32) -> (i32, i32, i32) {
    %c0_i32 = arith.constant 0 : i32
    %c0_i32_0 = arith.constant 0 : i32
    %c0_i32_1 = arith.constant 0 : i32
    return %arg0, %c0_i32, %c0_i32_0 : i32, i32, i32
  }
}

</mosaic_0001>

<bundles_post_ra>
// kernel: tpu_custom_call.1
= control target key start
LH: loop header
LB: loop body
LE: loop exit
PB: predicated region body
PF: predicated region fallthrough
CT: control target
= control target key end

     0   :  { %9 = vsyncpa [#allocation3], 0  ;;  %s1956_s0 = inlined_call_operand.hbm [shape: f32[8,8,32], index: 0, kind: input, shape index: {}]   ;;  %s1957_s1 = inlined_call_operand.hbm [shape: f32[8,8,32], index: 1, kind: input, shape index: {}]   ;;  %s1958_s2 = inlined_call_operand.hbm [shape: f32[8,8,32], index: 2, kind: input, shape index: {}]   ;;  %s1959_s3 = inlined_call_operand.hbm [shape: f32[8,8,8], index: 3, kind: input, shape index: {}]   ;;  %s1960_s4 = inlined_call_operand.hbm [shape: f32[8,8,32], index: 4, kind: output, shape index: {}]  }
   0x1   :  { %10 = vsyncpa [#allocation6], 0 }
   0x2   :  { %11 = vsyncpa [#allocation9], 0 }
   0x3   :  { %12 = vsyncpa [#allocation4], 0  ;;  %s1725_s15 = smov [#allocation5]   ;;  %s1726_s17 = smov [#allocation2]  }
   0x4   :  { %s30_s16 = sshll.u32 %s1725_s15, 4  ;;  %s18_s18 = sshll.u32 %s1726_s17, 4  ;;  %s31_s16 = int_to_ptr.vmem [resolvable:$true] %s30_s16  ;;  %s1759_s18 = int_to_ptr.vmem [resolvable:$true] %s18_s18 }
   0x5   :  { %s1607_s21 = scalar_lea.hbm %s1957_s1, 1024 }
   0x6   :  { %p1608_p0 = scmp.ne.s32.totalorder %s1957_s1, %s1607_s21  ;;  %p1611_p1 = scmp.lt.u32.totalorder %s1607_s21, %s1957_s1 }
   0x8   :  { %p1613_p2 = pnand %p1611_p1, %p1608_p0 }
   0xa   :  { %1616 = shalt.err (!%p1613_p2)
}
   0xb   :  { %s1617_s26 = scalar_lea.vmem %s31_s16, 1024  ;;  %p1622_p4 = scmp.lt.s32.totalorder %s31_s16, %s31_s16 }
   0xc   :  { %p1618_p3 = scmp.ne.s32.totalorder %s31_s16, %s1617_s26  ;;  %p1623_p5 = scmp.lt.s32.totalorder %s1617_s26, %s1617_s26 }
   0xe   :  { %p1624_p6 = por %p1623_p5, %p1622_p4 }
  0x10   :  { %p1625_p7 = pnand %p1624_p6, %p1618_p3 }
  0x12   :  { %1628 = shalt.err (!%p1625_p7)
}
  0x13   :  { %s1727_s27 = smov 128   ;;  %s1728_s28 = smov 8  }
  0x14   :  { %36 = dma.hbm_to_vmem [thread:$0]  %s1957_s1, 1024, %s31_s16, [#allocation6], %s1727_s27, %s1727_s27, %s1728_s28  }
  0x15   :  { %s1629_s7 = scalar_lea.hbm %s1956_s0, 1024 }
  0x16   :  { %p1630_p8 = scmp.ne.s32.totalorder %s1956_s0, %s1629_s7  ;;  %p1633_p9 = scmp.lt.u32.totalorder %s1629_s7, %s1956_s0 }
  0x18   :  { %p1635_p10 = pnand %p1633_p9, %p1630_p8 }
  0x1a   :  { %1638 = shalt.err (!%p1635_p10)
}
  0x1b   :  { %s1639_s12 = scalar_lea.vmem %s1759_s18, 1024  ;;  %p1644_p12 = scmp.lt.s32.totalorder %s1759_s18, %s1759_s18 }
  0x1c   :  { %p1640_p11 = scmp.ne.s32.totalorder %s1759_s18, %s1639_s12  ;;  %p1645_p13 = scmp.lt.s32.totalorder %s1639_s12, %s1639_s12 }
  0x1e   :  { %p1646_p0 = por %p1645_p13, %p1644_p12 }
  0x20   :  { %p1647_p1 = pnand %p1646_p0, %p1640_p11 }
  0x22   :  { %1650 = shalt.err (!%p1647_p1)
}
  0x23   :  { %24 = dma.hbm_to_vmem [thread:$0]  %s1956_s0, 1024, %s1759_s18, [#allocation3], %s1727_s27, %s1727_s27, %s1728_s28  }
  0x24   :  { %s1729_s14 = smov [#allocation7]   ;;  %s1730_s16 = smov [#allocation8]  }
  0x25   :  { %s42_s15 = sshll.u32 %s1729_s14, 4  ;;  %s54_s17 = sshll.u32 %s1730_s16, 4  ;;  %s43_s15 = int_to_ptr.vmem [resolvable:$true] %s42_s15  ;;  %s1796_s17 = int_to_ptr.vmem [resolvable:$true] %s54_s17 }
  0x26   :  { %s1651_s21 = scalar_lea.hbm %s1958_s2, 1024 }
  0x27   :  { %p1652_p2 = scmp.ne.s32.totalorder %s1958_s2, %s1651_s21  ;;  %p1655_p3 = scmp.lt.u32.totalorder %s1651_s21, %s1958_s2 }
  0x29   :  { %p1657_p4 = pnand %p1655_p3, %p1652_p2 }
  0x2b   :  { %1660 = shalt.err (!%p1657_p4)
}
  0x2c   :  { %s1661_s0 = scalar_lea.vmem %s43_s15, 1024  ;;  %p1666_p6 = scmp.lt.s32.totalorder %s43_s15, %s43_s15 }
  0x2d   :  { %p1662_p5 = scmp.ne.s32.totalorder %s43_s15, %s1661_s0  ;;  %p1667_p7 = scmp.lt.s32.totalorder %s1661_s0, %s1661_s0 }
  0x2f   :  { %p1668_p8 = por %p1667_p7, %p1666_p6 }
  0x31   :  { %p1669_p9 = pnand %p1668_p8, %p1662_p5 }
  0x33   :  { %1672 = shalt.err (!%p1669_p9)
}
  0x34   :  { %48 = dma.hbm_to_vmem [thread:$0]  %s1958_s2, 1024, %s43_s15, [#allocation6], %s1727_s27, %s1727_s27, %s1728_s28  }
  0x35   :  { %s1673_s5 = scalar_lea.hbm %s1959_s3, 1024 }
  0x36   :  { %p1674_p10 = scmp.ne.s32.totalorder %s1959_s3, %s1673_s5  ;;  %p1677_p11 = scmp.lt.u32.totalorder %s1673_s5, %s1959_s3 }
  0x38   :  { %p1679_p12 = pnand %p1677_p11, %p1674_p10 }
  0x3a   :  { %1682 = shalt.err (!%p1679_p12)
}
  0x3b   :  { %s1683_s10 = scalar_lea.vmem %s1796_s17, 1024  ;;  %p1688_p0 = scmp.lt.s32.totalorder %s1796_s17, %s1796_s17 }
  0x3c   :  { %p1684_p13 = scmp.ne.s32.totalorder %s1796_s17, %s1683_s10  ;;  %p1689_p1 = scmp.lt.s32.totalorder %s1683_s10, %s1683_s10 }
  0x3e   :  { %p1690_p2 = por %p1689_p1, %p1688_p0 }
  0x40   :  { %p1691_p3 = pnand %p1690_p2, %p1684_p13 }
  0x42   :  { %1694 = shalt.err (!%p1691_p3)
}
  0x43   :  { %60 = dma.hbm_to_vmem [thread:$0]  %s1959_s3, 1024, %s1796_s17, [#allocation9], %s1727_s27, %s1727_s27, %s1728_s28  }
  0x44   :  { %1717 = dma.done.wait [#allocation3], 1024  }
  0x45   :  { %1718 = vsyncadd [#allocation3], 4294966272 }
  0x46   :  { %1719 = dma.done.wait [#allocation6], 2048  }
  0x47   :  { %1720 = vsyncadd [#allocation6], 4294965248 }
  0x48   :  { %1721 = dma.done.wait [#allocation9], 1024  }
  0x49   :  { %1722 = vsyncadd [#allocation9], 4294966272  ;;  %v1731_v0 = vmov 0.0   ;;  %vm1732_vm0 = vmmov 0   ;;  %vm97_vm1 = vcmask 261120   ;;  %v81_v1 = vld [vmem:[#allocation5] sm:$0xff] }
  0x4a   :  { %1486 = vmatprep.subr.mxu0 %v1731_v0  ;;  %1488 = vmatprep.mubr.msk.f32.mxu0 %vm1732_vm0, %v1731_v0  ;;  %v82_v2 = vld [vmem:[#allocation5 + $0x8] sm:$0xff]  ;;  %v73_v3 = vld [vmem:[#allocation2] sm:$0xff]  ;;  %v83_v5 = vld [vmem:[#allocation5 + $0x10] sm:$0xff]  ;;  %vm714_vm2 = vcmask 64512   ;;  %s1733_s3 = smov [#allocation10]  }
  0x4b   :  { %1491 = vmatprep.subr.mxu1 %v1731_v0  ;;  %1493 = vmatprep.mubr.msk.f32.mxu1 %vm1732_vm0, %v1731_v0  ;;  %v74_v4 = vld [vmem:[#allocation2 + $0x8] sm:$0xff]  ;;  %v84_v6 = vld [vmem:[#allocation5 + $0x18] sm:$0xff]  ;;  %v75_v7 = vld [vmem:[#allocation2 + $0x10] sm:$0xff]  ;;  %s1416_s12 = sshll.u32 %s1733_s3, 4  ;;  %s1417_s12 = int_to_ptr.vmem [resolvable:$true] %s1416_s12 }
  0x4c   :  { %1487 = vmatpush3.xpose.msk.msra.mxu0 %vm97_vm1, %v81_v1  ;;  %1492 = vmatpush3.xpose.msk.msra.mxu1 %vm97_vm1, %v82_v2  ;;  %v85_v8 = vld [vmem:[#allocation5 + $0x20] sm:$0xff]  ;;  %v76_v9 = vld [vmem:[#allocation2 + $0x18] sm:$0xff]  ;;  %v86_v10 = vld [vmem:[#allocation5 + $0x28] sm:$0xff]  ;;  %s1695_s1 = scalar_lea.vmem %s1417_s12, 1024  ;;  %p1700_p5 = scmp.lt.s32.totalorder %s1417_s12, %s1417_s12 }
  0x4d   :  { %1496 = vmatprep.subr.mxu0 %v1731_v0  ;;  %1501 = vmatprep.subr.mxu1 %v1731_v0  ;;  %v77_v11 = vld [vmem:[#allocation2 + $0x20] sm:$0xff]  ;;  %v87_v12 = vld [vmem:[#allocation5 + $0x30] sm:$0xff]  ;;  %v78_v13 = vld [vmem:[#allocation2 + $0x28] sm:$0xff]  ;;  %p1696_p4 = scmp.ne.s32.totalorder %s1417_s12, %s1695_s1  ;;  %p1701_p6 = scmp.lt.s32.totalorder %s1695_s1, %s1695_s1 }
  0x4e   :  { %v88_v14 = vld [vmem:[#allocation5 + $0x38] sm:$0xff]  ;;  %v79_v15 = vld [vmem:[#allocation2 + $0x30] sm:$0xff] }
  0x4f   :  { %1489 = vmatmul.mubr.msk.f32.vlgmr.msra.gmra.mrb[0].mxu0 %vm97_vm1, %v73_v3  ;;  %1494 = vmatmul.mubr.msk.f32.vlgmr.msra.gmra.mrb[0].mxu1 %vm97_vm1, %v74_v4  ;;  %v80_v16 = vld [vmem:[#allocation2 + $0x38] sm:$0xff]  ;;  %p1702_p7 = por %p1701_p6, %p1700_p5 }
  0x50   :  { %1497 = vmatpush3.xpose.msk.msra.mxu0 %vm97_vm1, %v83_v5  ;;  %1498 = vmatprep.mubr.msk.f32.mxu0 %vm1732_vm0, %v1731_v0 }
  0x51   :  { %1506 = vmatprep.subr.mxu0 %v1731_v0  ;;  %1502 = vmatpush3.xpose.msk.msra.mxu1 %vm97_vm1, %v84_v6  ;;  %p1703_p8 = pnand %p1702_p7, %p1696_p4 }
  0x52   :  { %1503 = vmatprep.mubr.msk.f32.mxu1 %vm1732_vm0, %v1731_v0  ;;  %1511 = vmatprep.subr.mxu1 %v1731_v0 }
  0x53   :  { %1499 = vmatmul.mubr.msk.f32.vlgmr.msra.gmra.mrb[2].mxu0 %vm97_vm1, %v75_v7 }
  0x54   :  { %1507 = vmatpush3.xpose.msk.msra.mxu0 %vm97_vm1, %v85_v8  ;;  %1508 = vmatprep.mubr.msk.f32.mxu0 %vm1732_vm0, %v1731_v0 }
  0x55   :  { %1504 = vmatmul.mubr.msk.f32.vlgmr.msra.gmra.mrb[2].mxu1 %vm97_vm1, %v76_v9  ;;  %1516 = vmatprep.subr.mxu0 %v1731_v0 }
  0x56   :  { %1512 = vmatpush3.xpose.msk.msra.mxu1 %vm97_vm1, %v86_v10  ;;  %1513 = vmatprep.mubr.msk.f32.mxu1 %vm1732_vm0, %v1731_v0 }
  0x57   :  { %1509 = vmatmul.mubr.msk.f32.vlgmr.msra.gmra.mrb[4].mxu0 %vm97_vm1, %v77_v11  ;;  %1521 = vmatprep.subr.mxu1 %v1731_v0 }
  0x58   :  { %1517 = vmatpush3.xpose.msk.msra.mxu0 %vm97_vm1, %v87_v12  ;;  %1518 = vmatprep.mubr.msk.f32.mxu0 %vm1732_vm0, %v1731_v0 }
  0x59   :  { %1514 = vmatmul.mubr.msk.f32.vlgmr.msra.gmra.mrb[4].mxu1 %vm97_vm1, %v78_v13  ;;  %1526 = vmatprep.subr.mxu0 %v1731_v0 }
  0x5a   :  { %1522 = vmatpush3.xpose.msk.msra.mxu1 %vm97_vm1, %v88_v14  ;;  %1523 = vmatprep.mubr.msk.f32.mxu1 %vm1732_vm0, %v1731_v0 }
  0x5b   :  { %1519 = vmatmul.mubr.msk.f32.vlgmr.msra.gmra.mrb[6].mxu0 %vm97_vm1, %v79_v15  ;;  %1531 = vmatprep.subr.mxu1 %v1731_v0 }
  0x5c   :  { %1528 = vmatprep.mubr.msk.f32.mxu0 %vm1732_vm0, %v1731_v0 }
  0x5d   :  { %1524 = vmatmul.mubr.msk.f32.vlgmr.msra.gmra.mrb[6].mxu1 %vm97_vm1, %v80_v16 }
  0x5e   :  { %1533 = vmatprep.mubr.msk.f32.mxu1 %vm1732_vm0, %v1731_v0 }
 0x122   :  { %v170_v17 = vpop.f32.mrb[0].mxu0  ;;  %v246_v18 = vpop.f32.mrb[0].mxu1 }
 0x123   :  { %v706_v19 = vmul.f32 10.0, %v170_v17  ;;  %v1490_v20 = vpop.f32.mrb[1].mxu0  ;;  %v707_v21 = vmul.f32 10.0, %v246_v18  ;;  %v1495_v22 = vpop.f32.mrb[1].mxu1 }
 0x125   :  { %v715_v23 = vsel %vm714_vm2, %v706_v19, -inf  ;;  %v718_v27 = vsel %vm714_vm2, %v707_v21, -inf }
 0x126   :  { %716 = vmax.xlane.f32.xlu0 %v715_v23  ;;  %v322_v24 = vpop.f32.mrb[2].mxu0 }
 0x127   :  { %v708_v25 = vmul.f32 10.0, %v322_v24  ;;  %v1500_v26 = vpop.f32.mrb[3].mxu0 }
 0x128   :  { %v398_v28 = vpop.f32.mrb[2].mxu1  ;;  %v89_v26 = vld [vmem:[#allocation7] sm:$0xff] }
 0x129   :  { %v709_v29 = vmul.f32 10.0, %v398_v28  ;;  %v721_v30 = vsel %vm714_vm2, %v708_v25, -inf  ;;  %v1505_v31 = vpop.f32.mrb[3].mxu1  ;;  %1527 = vmatpush3.msra.mxu0 %v89_v26 }
 0x12a   :  { %719 = vmax.xlane.f32.xlu0 %v718_v27  ;;  %722 = vmax.xlane.f32.xlu1 %v721_v30  ;;  %v474_v32 = vpop.f32.mrb[4].mxu0  ;;  %v90_v27 = vld [vmem:[#allocation7 + $0x8] sm:$0xff] }
 0x12b   :  { %v710_v33 = vmul.f32 10.0, %v474_v32  ;;  %v1510_v34 = vpop.f32.mrb[5].mxu0  ;;  %v724_v35 = vsel %vm714_vm2, %v709_v29, -inf  ;;  %1536 = vmatprep.subr.mxu0 %v1731_v0  ;;  %1532 = vmatpush3.msra.mxu1 %v90_v27 }
 0x12c   :  { %v550_v36 = vpop.f32.mrb[4].mxu1  ;;  %1541 = vmatprep.subr.mxu1 %v1731_v0  ;;  %v803_v34 = vld [vmem:[#allocation8] sm:$0xff] }
 0x12d   :  { %v711_v37 = vmul.f32 10.0, %v550_v36  ;;  %v727_v38 = vsel %vm714_vm2, %v710_v33, -inf  ;;  %v1515_v39 = vpop.f32.mrb[5].mxu1 }
 0x12e   :  { %725 = vmax.xlane.f32.xlu1 %v724_v35  ;;  %728 = vmax.xlane.f32.xlu0 %v727_v38  ;;  %v626_v40 = vpop.f32.mrb[6].mxu0  ;;  %v91_v39 = vld [vmem:[#allocation7 + $0x10] sm:$0xff] }
 0x12f   :  { %v712_v41 = vmul.f32 10.0, %v626_v40  ;;  %v730_v42 = vsel %vm714_vm2, %v711_v37, -inf  ;;  %v1520_v43 = vpop.f32.mrb[7].mxu0 }
 0x130   :  { %v702_v44 = vpop.f32.mrb[6].mxu1 }
 0x131   :  { %v713_v45 = vmul.f32 10.0, %v702_v44  ;;  %v733_v46 = vsel %vm714_vm2, %v712_v41, -inf  ;;  %v1525_v47 = vpop.f32.mrb[7].mxu1 }
 0x132   :  { %731 = vmax.xlane.f32.xlu1 %v730_v42  ;;  %734 = vmax.xlane.f32.xlu0 %v733_v46 }
 0x133   :  { %v736_v48 = vsel %vm714_vm2, %v713_v45, -inf }
 0x136   :  { %737 = vmax.xlane.f32.xlu1 %v736_v48  ;;  %v92_v48 = vld [vmem:[#allocation7 + $0x18] sm:$0xff] }
 0x1b3   :  { %v717_v49 = vpop.xlane.xlu0 %716 }
 0x1b4   :  { %v739_v50 = vsub.f32 %v706_v19, %v717_v49 }
 0x1b6   :  { %v747_v51 = vmul.f32 1.442695, %v739_v50 }
 0x1b7   :  { %v720_v52 = vpop.xlane.xlu0 %719  ;;  %v723_v53 = vpop.xlane.xlu1 %722 }
 0x1b8   :  { %1575 = vpow2.f32 %v747_v51  ;;  %v740_v54 = vsub.f32 %v707_v21, %v720_v52  ;;  %v741_v55 = vsub.f32 %v708_v25, %v723_v53  ;;  %v93_v51 = vld [vmem:[#allocation7 + $0x20] sm:$0xff]  ;;  %v806_v52 = vld [vmem:[#allocation8 + $0x18] sm:$0xff] }
 0x1ba   :  { %v749_v56 = vmul.f32 1.442695, %v740_v54  ;;  %v751_v57 = vmul.f32 1.442695, %v741_v55  ;;  %v807_v55 = vld [vmem:[#allocation8 + $0x20] sm:$0xff] }
 0x1bb   :  { %v726_v58 = vpop.xlane.xlu1 %725  ;;  %v729_v59 = vpop.xlane.xlu0 %728 }
 0x1bc   :  { %1577 = vpow2.f32 %v749_v56  ;;  %v742_v60 = vsub.f32 %v709_v29, %v726_v58  ;;  %v743_v61 = vsub.f32 %v710_v33, %v729_v59  ;;  %v94_v58 = vld [vmem:[#allocation7 + $0x28] sm:$0xff] }
 0x1bd   :  { %1579 = vpow2.f32 %v751_v57 }
 0x1be   :  { %v753_v62 = vmul.f32 1.442695, %v742_v60  ;;  %v755_v63 = vmul.f32 1.442695, %v743_v61  ;;  %v95_v61 = vld [vmem:[#allocation7 + $0x30] sm:$0xff] }
 0x1bf   :  { %v732_v1 = vpop.xlane.xlu1 %731  ;;  %v735_v2 = vpop.xlane.xlu0 %734 }
 0x1c0   :  { %1581 = vpow2.f32 %v753_v62  ;;  %v744_v3 = vsub.f32 %v711_v37, %v732_v1  ;;  %v745_v4 = vsub.f32 %v712_v41, %v735_v2  ;;  %v804_v41 = vld [vmem:[#allocation8 + $0x8] sm:$0xff]  ;;  %v809_v2 = vld [vmem:[#allocation8 + $0x30] sm:$0xff] }
 0x1c1   :  { %1583 = vpow2.f32 %v755_v63  ;;  %v808_v62 = vld [vmem:[#allocation8 + $0x28] sm:$0xff] }
 0x1c2   :  { %v1576_v5 = vpop.eup %1575  ;;  %v757_v6 = vmul.f32 1.442695, %v744_v3  ;;  %v759_v7 = vmul.f32 1.442695, %v745_v4 }
 0x1c3   :  { %v738_v8 = vpop.xlane.xlu1 %737  ;;  %v763_v9 = vsel %vm714_vm2, %v1576_v5, 0.0 }
 0x1c4   :  { %1585 = vpow2.f32 %v757_v6  ;;  %v746_v10 = vsub.f32 %v713_v45, %v738_v8  ;;  %764 = vadd.xlane.f32.xlu0 %v763_v9  ;;  %v805_v45 = vld [vmem:[#allocation8 + $0x10] sm:$0xff]  ;;  %v810_v8 = vld [vmem:[#allocation8 + $0x38] sm:$0xff] }
 0x1c5   :  { %1587 = vpow2.f32 %v759_v7 }
 0x1c6   :  { %v1578_v11 = vpop.eup %1577  ;;  %v761_v12 = vmul.f32 1.442695, %v746_v10 }
 0x1c7   :  { %v1580_v13 = vpop.eup %1579  ;;  %v766_v14 = vsel %vm714_vm2, %v1578_v11, 0.0 }
 0x1c8   :  { %1589 = vpow2.f32 %v761_v12  ;;  %767 = vadd.xlane.f32.xlu1 %v766_v14  ;;  %v769_v15 = vsel %vm714_vm2, %v1580_v13, 0.0 }
 0x1c9   :  { %770 = vadd.xlane.f32.xlu0 %v769_v15 }
 0x1ca   :  { %v1582_v16 = vpop.eup %1581 }
 0x1cb   :  { %v1584_v17 = vpop.eup %1583  ;;  %v772_v18 = vsel %vm714_vm2, %v1582_v16, 0.0 }
 0x1cc   :  { %773 = vadd.xlane.f32.xlu1 %v772_v18  ;;  %v775_v19 = vsel %vm714_vm2, %v1584_v17, 0.0 }
 0x1cd   :  { %776 = vadd.xlane.f32.xlu0 %v775_v19 }
 0x1ce   :  { %v1892_v20 = vpop.eup %1585 }
 0x1cf   :  { %v1894_v21 = vpop.eup %1587  ;;  %v778_v22 = vsel %vm714_vm2, %v1892_v20, 0.0 }
 0x1d0   :  { %779 = vadd.xlane.f32.xlu1 %v778_v22  ;;  %v781_v23 = vsel %vm714_vm2, %v1894_v21, 0.0 }
 0x1d1   :  { %782 = vadd.xlane.f32.xlu0 %v781_v23 }
 0x1d2   :  { %v1900_v24 = vpop.eup %1589 }
 0x1d3   :  { %v784_v25 = vsel %vm714_vm2, %v1900_v24, 0.0 }
 0x1d4   :  { %785 = vadd.xlane.f32.xlu1 %v784_v25 }
 0x251   :  { %v765_v28 = vpop.xlane.xlu0 %764 }
 0x252   :  { %1591 = vrcp.f32 %v765_v28 }
 0x255   :  { %v768_v29 = vpop.xlane.xlu1 %767 }
 0x256   :  { %1593 = vrcp.f32 %v768_v29  ;;  %v771_v30 = vpop.xlane.xlu0 %770 }
 0x257   :  { %1595 = vrcp.f32 %v771_v30 }
 0x259   :  { %v774_v31 = vpop.xlane.xlu1 %773 }
 0x25a   :  { %1597 = vrcp.f32 %v774_v31  ;;  %v777_v32 = vpop.xlane.xlu0 %776 }
 0x25b   :  { %1599 = vrcp.f32 %v777_v32 }
 0x25c   :  { %v1592_v33 = vpop.eup %1591 }
 0x25d   :  { %v795_v35 = vmul.f32 %v1592_v33, %v1576_v5  ;;  %v780_v36 = vpop.xlane.xlu1 %779  ;;  %v96_v5 = vld [vmem:[#allocation7 + $0x38] sm:$0xff] }
 0x25e   :  { %1601 = vrcp.f32 %v780_v36  ;;  %v783_v37 = vpop.xlane.xlu0 %782 }
 0x25f   :  { %1603 = vrcp.f32 %v783_v37  ;;  %v811_v38 = vmul.f32 %v803_v34, %v795_v35 }
 0x260   :  { %v1594_v40 = vpop.eup %1593 }
 0x261   :  { %v1596_v42 = vpop.eup %1595  ;;  %v796_v43 = vmul.f32 %v1594_v40, %v1578_v11  ;;  %v786_v44 = vpop.xlane.xlu1 %785  ;;  %1529 = vmatmul.mubr.msk.f32.vlgmr.msra.gmra.mrb[8].mxu0 %vm714_vm2, %v811_v38 }
 0x262   :  { %v797_v46 = vmul.f32 %v1596_v42, %v1580_v13  ;;  %1605 = vrcp.f32 %v786_v44  ;;  %1537 = vmatpush3.msra.mxu0 %v91_v39  ;;  %1538 = vmatprep.mubr.msk.f32.mxu0 %vm1732_vm0, %v1731_v0 }
 0x263   :  { %v812_v47 = vmul.f32 %v804_v41, %v796_v43  ;;  %1546 = vmatprep.subr.mxu0 %v1731_v0 }
 0x264   :  { %v1598_v49 = vpop.eup %1597  ;;  %v813_v50 = vmul.f32 %v805_v45, %v797_v46 }
 0x265   :  { %v1600_v53 = vpop.eup %1599  ;;  %v798_v54 = vmul.f32 %v1598_v49, %v1582_v16  ;;  %1534 = vmatmul.mubr.msk.f32.vlgmr.msra.gmra.mrb[8].mxu1 %vm714_vm2, %v812_v47 }
 0x266   :  { %v799_v56 = vmul.f32 %v1600_v53, %v1584_v17  ;;  %1539 = vmatmul.mubr.msk.f32.vlgmr.msra.gmra.mrb[10].mxu0 %vm714_vm2, %v813_v50  ;;  %1542 = vmatpush3.msra.mxu1 %v92_v48 }
 0x267   :  { %1543 = vmatprep.mubr.msk.f32.mxu1 %vm1732_vm0, %v1731_v0  ;;  %1547 = vmatpush3.msra.mxu0 %v93_v51  ;;  %v814_v57 = vmul.f32 %v806_v52, %v798_v54 }
 0x268   :  { %v1602_v59 = vpop.eup %1601  ;;  %1548 = vmatprep.mubr.msk.f32.mxu0 %vm1732_vm0, %v1731_v0  ;;  %v815_v60 = vmul.f32 %v807_v55, %v799_v56  ;;  %1551 = vmatprep.subr.mxu1 %v1731_v0 }
 0x269   :  { %v1604_v63 = vpop.eup %1603  ;;  %v800_v1 = vmul.f32 %v1602_v59, %v1892_v20  ;;  %1544 = vmatmul.mubr.msk.f32.vlgmr.msra.gmra.mrb[10].mxu1 %vm714_vm2, %v814_v57  ;;  %1556 = vmatprep.subr.mxu0 %v1731_v0 }
 0x26a   :  { %v801_v3 = vmul.f32 %v1604_v63, %v1894_v21  ;;  %1549 = vmatmul.mubr.msk.f32.vlgmr.msra.gmra.mrb[12].mxu0 %vm714_vm2, %v815_v60  ;;  %1552 = vmatpush3.msra.mxu1 %v94_v58 }
 0x26b   :  { %1553 = vmatprep.mubr.msk.f32.mxu1 %vm1732_vm0, %v1731_v0  ;;  %1557 = vmatpush3.msra.mxu0 %v95_v61  ;;  %v816_v4 = vmul.f32 %v808_v62, %v800_v1 }
 0x26c   :  { %v1606_v6 = vpop.eup %1605  ;;  %1558 = vmatprep.mubr.msk.f32.mxu0 %vm1732_vm0, %v1731_v0  ;;  %v817_v7 = vmul.f32 %v809_v2, %v801_v3  ;;  %1561 = vmatprep.subr.mxu1 %v1731_v0 }
 0x26d   :  { %v802_v9 = vmul.f32 %v1606_v6, %v1900_v24  ;;  %1554 = vmatmul.mubr.msk.f32.vlgmr.msra.gmra.mrb[12].mxu1 %vm714_vm2, %v816_v4 }
 0x26e   :  { %1559 = vmatmul.mubr.msk.f32.vlgmr.msra.gmra.mrb[14].mxu0 %vm714_vm2, %v817_v7  ;;  %1562 = vmatpush3.msra.mxu1 %v96_v5 }
 0x26f   :  { %1563 = vmatprep.mubr.msk.f32.mxu1 %vm1732_vm0, %v1731_v0  ;;  %v818_v10 = vmul.f32 %v810_v8, %v802_v9 }
 0x271   :  { %1564 = vmatmul.mubr.msk.f32.vlgmr.msra.gmra.mrb[14].mxu1 %vm714_vm2, %v818_v10 }
 0x334   :  { %v888_v11 = vpop.f32.mrb[8].mxu0 }
 0x335   :  { %1403 = vst.msk [vmem:[#allocation10] sm:$0xff] %vm97_vm1, %v888_v11  ;;  %v1530_v12 = vpop.f32.mrb[9].mxu0 }
 0x338   :  { %v961_v13 = vpop.f32.mrb[8].mxu1 }
 0x339   :  { %1404 = vst.msk [vmem:[#allocation10 + $0x8] sm:$0xff] %vm97_vm1, %v961_v13  ;;  %v1034_v14 = vpop.f32.mrb[10].mxu0  ;;  %v1535_v15 = vpop.f32.mrb[9].mxu1 }
 0x33a   :  { %1405 = vst.msk [vmem:[#allocation10 + $0x10] sm:$0xff] %vm97_vm1, %v1034_v14  ;;  %v1540_v16 = vpop.f32.mrb[11].mxu0 }
 0x33c   :  { %v1107_v17 = vpop.f32.mrb[10].mxu1 }
 0x33d   :  { %1406 = vst.msk [vmem:[#allocation10 + $0x18] sm:$0xff] %vm97_vm1, %v1107_v17  ;;  %v1180_v18 = vpop.f32.mrb[12].mxu0  ;;  %v1545_v0 = vpop.f32.mrb[11].mxu1 }
 0x33e   :  { %1407 = vst.msk [vmem:[#allocation10 + $0x20] sm:$0xff] %vm97_vm1, %v1180_v18  ;;  %v1550_v19 = vpop.f32.mrb[13].mxu0 }
 0x340   :  { %v1253_v20 = vpop.f32.mrb[12].mxu1 }
 0x341   :  { %1408 = vst.msk [vmem:[#allocation10 + $0x28] sm:$0xff] %vm97_vm1, %v1253_v20  ;;  %v1326_v21 = vpop.f32.mrb[14].mxu0  ;;  %v1555_v22 = vpop.f32.mrb[13].mxu1 }
 0x342   :  { %1409 = vst.msk [vmem:[#allocation10 + $0x30] sm:$0xff] %vm97_vm1, %v1326_v21  ;;  %v1560_v23 = vpop.f32.mrb[15].mxu0 }
 0x344   :  { %v1399_v24 = vpop.f32.mrb[14].mxu1 }
 0x345   :  { %1410 = vst.msk [vmem:[#allocation10 + $0x38] sm:$0xff] %vm97_vm1, %v1399_v24  ;;  %v1565_v25 = vpop.f32.mrb[15].mxu1 }
 0x346   :  { %1706 = shalt.err (!%p1703_p8)
}
 0x347   :  { %s1707_s15 = scalar_lea.hbm %s1960_s4, 1024 }
 0x348   :  { %p1708_p9 = scmp.ne.s32.totalorder %s1960_s4, %s1707_s15  ;;  %p1711_p10 = scmp.lt.u32.totalorder %s1707_s15, %s1960_s4 }
 0x34a   :  { %p1713_p11 = pnand %p1711_p10, %p1708_p9 }
 0x34c   :  { %1716 = shalt.err (!%p1713_p11)
}
 0x34d   :  { %1422 = dma.vmem_to_hbm [thread:$0]  %s1417_s12, 1024, %s1960_s4, [#allocation4], %s1727_s27, %s1727_s27, %s1728_s28  }
 0x34e   :  { %1723 = dma.done.wait [#allocation4], 1024  }
 0x34f   :  { %1724 = vsyncadd [#allocation4], 4294966272 }
 0x350   :  { %1426 = vsyncpa [#allocation3], 1 }
 0x351   :  { %1427 = vsyncpa [#allocation6], 1 }
 0x352   :  { %1428 = vsyncpa [#allocation9], 1 }
 0x353   :  { %1429 = vsyncpa [#allocation4], 1 }

</bundles_post_ra>
